<compile_context>
chip_gen: v6e
topology: v6e:2x2x1
jax: 0.10.0
libtpu: 0.0.40
codegen_flags: <defaults>
</compile_context>

<pallas_src>
import functools

import jax
import jax.numpy as jnp
from jax.experimental import pallas as pl
from jax.experimental.pallas import tpu as pltpu


# ------------------------------ constants ---------------------------------- #

_LANE = 128
_PAD_TO = 8 * _LANE  # pad ragged sizes to a (sublane, lane)-friendly multiple
# Candidate slab widths (lane dim).  Wider => fewer grid steps, unmasked vst.
_WIDTH_CANDIDATES = (2048, 1024, 512, 256, 128)


# ----------------------- per-generation configuration ---------------------- #

@functools.lru_cache(maxsize=1)
def _generation_config():
    """(target_block_bytes, vmem_limit_bytes, use_core_parallel) for this TPU."""
    kind = ""
    try:
        kind = jax.devices()[0].device_kind.lower()
    except Exception:
        pass

    # Conservative defaults for unknown TPU generations.
    target = 4 << 20
    vmem_limit = 64 << 20
    core_parallel = False

    if "v7" in kind or "7x" in kind:
        # 64 MiB physical VMEM per TC, ~3.2 TB/s HBM, 2 TensorCores per chip.
        target, vmem_limit, core_parallel = 8 << 20, 48 << 20, True
    elif "v6" in kind:
        # 128 MiB physical VMEM, ~1.4 TB/s HBM: bigger blocks amortize the
        # ~0.35 us per-step overhead.
        target, vmem_limit = 16 << 20, 96 << 20
    elif "v5" in kind:
        # v5e: 128 MiB physical VMEM but only a 16 MiB scoped default ->
        # raise the limit instead of shrinking the block.
        target, vmem_limit = 8 << 20, 64 << 20
    elif "v2" in kind or "v3" in kind:
        # Small-VMEM legacy parts: stay under the default scoped limit.
        target, vmem_limit = 2 << 20, None

    if vmem_limit is not None:
        # Clamp against the real VMEM capacity if the runtime exposes it.
        try:
            cap = int(pltpu.get_tpu_info().vmem_capacity_bytes)
            vmem_limit = min(vmem_limit, (cap * 3) // 4)
        except Exception:
            pass
        # (in + out) x double-buffer must fit under the limit with headroom.
        while target > (1 << 20) and 4 * target > vmem_limit - (4 << 20):
            target //= 2

    return target, vmem_limit, core_parallel


# ------------------------------- kernel ------------------------------------ #

def _neg_scale_kernel(lam_ref, g_ref, o_ref):
    # lam_ref: (1, 1) f32 scalar in SMEM; g_ref/o_ref: (tile_rows, width) tile.
    scale = -lam_ref[0, 0]                                   # f32 scalar
    o_ref[...] = (scale * g_ref[...]).astype(o_ref.dtype)


# --------------------------- pallas wrappers -------------------------------- #

def _neg_scale_2d(slab, lam2d, *, force_single_core=False):
    """slab: [rows, width] with width % 128 == 0.  Returns -lambda * slab."""
    target_bytes, vmem_limit, core_parallel = _generation_config()
    if force_single_core:
        core_parallel = False

    rows, width = slab.shape
    itemsize = jnp.dtype(slab.dtype).itemsize

    # Tile height: as tall as the per-generation block budget allows, rounded
    # to the dtype's sublane packing (8 rows f32, 16 bf16, 32 int8/fp8).
    sub = 8 * max(1, 4 // itemsize)
    tile_rows = (target_bytes // (width * itemsize)) // sub * sub
    tile_rows = max(sub, tile_rows)
    if tile_rows >= rows:
        tile_rows = rows  # full extent along rows -> always a legal block shape
    grid = (pl.cdiv(rows, tile_rows),)  # last partial block is masked by Pallas

    # On v7x, shard the row grid across both TensorCores; plain "parallel"
    # elsewhere (v5e/v6e have a single TC).
    semantics = (
        (pltpu.CORE_PARALLEL,) if (core_parallel and grid[0] > 1) else ("parallel",)
    )

    n_elems = rows * width
    cost = pl.CostEstimate(
        flops=n_elems,                       # one multiply per element
        transcendentals=0,
        bytes_accessed=2 * n_elems * itemsize,
    )

    return pl.pallas_call(
        _neg_scale_kernel,
        out_shape=jax.ShapeDtypeStruct((rows, width), slab.dtype),
        grid_spec=pl.GridSpec(
            grid=grid,
            in_specs=[
                # lambda scalar lives in SMEM; passing it as data (not a
                # Python-baked constant) avoids one recompile per lambda value.
                pl.BlockSpec(memory_space=pltpu.MemorySpace.SMEM),
                pl.BlockSpec((tile_rows, width), lambda i: (i, 0)),
            ],
            out_specs=pl.BlockSpec((tile_rows, width), lambda i: (i, 0)),
        ),
        # dx has the gradient's shape/dtype and the gradient is dead after the
        # bwd: write the result in place (P8) instead of allocating a second
        # full-size HBM buffer.  XLA inserts a copy if the operand is still live.
        input_output_aliases={1: 0},
        compiler_params=pltpu.CompilerParams(
            dimension_semantics=semantics,
            vmem_limit_bytes=vmem_limit,
        ),
        cost_estimate=cost,
    )(lam2d, slab)


def _run_slab(slab, lam2d):
    _, _, core_parallel = _generation_config()
    if core_parallel:
        try:
            return _neg_scale_2d(slab, lam2d)
        except Exception:
            # CORE_PARALLEL unsupported by this jax/libtpu combo: single core.
            return _neg_scale_2d(slab, lam2d, force_single_core=True)
    return _neg_scale_2d(slab, lam2d)


def _choose_width(n):
    """Widest lane dimension that tiles n exactly (prefer >= 8 full sublanes)."""
    for w in _WIDTH_CANDIDATES:
        if n % w == 0 and (n // w) % 8 == 0:
            return w
    for w in _WIDTH_CANDIDATES:
        if n % w == 0:
            return w
    return None


def _neg_scale(g, lam):
    """dx = -lam * g, computed by the Pallas kernel."""
    shape = g.shape
    lam2d = jnp.asarray(lam, jnp.float32).reshape(1, 1)

    flat = g.reshape(-1)
    n = flat.shape[0]
    if n == 0:
        return g

    width = _choose_width(n)
    if width is not None:
        out = _run_slab(flat.reshape(n // width, width), lam2d)
        return out.reshape(shape)

    # Ragged size: one cheap pad to a lane/sublane-aligned length, stream the
    # whole gradient through a single Pallas call, slice the valid prefix.
    # (No concatenate of the full output -> no second full HBM pass.)
    n_pad = ((n + _PAD_TO - 1) // _PAD_TO) * _PAD_TO
    padded = jnp.pad(flat, (0, n_pad - n))
    width = _choose_width(n_pad) or _LANE
    out = _run_slab(padded.reshape(n_pad // width, width), lam2d)
    return out.reshape(-1)[:n].reshape(shape)


# ------------------------ gradient-reversal module -------------------------- #

@jax.custom_vjp
def gradient_reversal(x, lambda_):
    """Forward: identity passthrough.  Backward: dx = -lambda_ * g."""
    return x  # JAX arrays are immutable: passthrough == PyTorch's x.clone()


def _grl_fwd(x, lambda_):
    return x, lambda_


def _grl_bwd(lambda_, g):
    dx = _neg_scale(g, lambda_)
    # Zero cotangent with exactly the primal lambda_'s dtype / weak-type.
    return dx, jnp.zeros_like(lambda_)


gradient_reversal.defvjp(_grl_fwd, _grl_bwd)


class GradientReversal:
    """JAX/Pallas equivalent of the PyTorch GradientReversal module."""

    def __init__(self, lambda_=1.0):
        # Stored as data so annealing lambda_ never forces a recompile.
        self.lambda_ = jnp.asarray(lambda_, dtype=jnp.float32)

    def __call__(self, x):
        return gradient_reversal(x, self.lambda_)


# --------------------------------- main ------------------------------------- #

if __name__ == "__main__":
    key = jax.random.PRNGKey(0)
    # NCHW input, small shapes: batch=2, channels=4, spatial=16x16
    x = jax.random.normal(key, (2, 4, 16, 16), dtype=jnp.float32)

    layer = GradientReversal(lambda_=0.5)

    # Forward: pure identity passthrough (no kernel, no HBM copy).
    y = layer(x)
    jax.block_until_ready(y)
    assert y.shape == x.shape and y.dtype == x.dtype
    assert jnp.allclose(y, x), "forward must be identity"

    # Backward: grad of sum(y) w.r.t. x must be -lambda * 1 (Pallas kernel).
    g = jax.grad(lambda a: jnp.sum(layer(a)))(x)
    jax.block_until_ready(g)
    assert jnp.allclose(g, -0.5 * jnp.ones_like(x)), "backward must be -lambda*g"

    # Direct kernel check against a jnp reference (128-divisible path).
    gup = jax.random.normal(jax.random.PRNGKey(1), x.shape, dtype=jnp.float32)
    ref = -0.5 * gup  # reference computed BEFORE the (input-aliased) kernel call
    dx = _neg_scale(gup, jnp.asarray(0.5, jnp.float32))
    jax.block_until_ready(dx)
    assert jnp.allclose(dx, ref, rtol=1e-6, atol=1e-6)

    # Ragged-size path: single padded slab, no concatenate.
    gr = jax.random.normal(jax.random.PRNGKey(2), (3, 5, 7), dtype=jnp.float32)
    ref_r = -1.25 * gr
    dr = _neg_scale(gr, jnp.asarray(1.25, jnp.float32))
    jax.block_until_ready(dr)
    assert dr.shape == gr.shape and dr.dtype == gr.dtype
    assert jnp.allclose(dr, ref_r, rtol=1e-6, atol=1e-6)

    print("KERNEL_OK")
</pallas_src>

<mosaic_0001>
module attributes {stable_mosaic.version = 11 : i64} {
  func.func @_neg_scale_kernel(%arg0: i32, %arg1: memref<1x1xf32, #tpu.memory_space<smem>>, %arg2: memref<8x256xf32, #tpu.memory_space<vmem>>, %arg3: memref<8x256xf32, #tpu.memory_space<vmem>>) attributes {dimension_semantics = [#tpu.dimension_semantics<parallel>], iteration_bounds = array<i64: 1>, scalar_prefetch = 0 : i64, scratch_operands = 0 : i64, tpu.core_type = #tpu.core_type<tc>, window_params = [{transform_indices = @transform_0, window_bounds = array<i64: 1, 1>}, {transform_indices = @transform_1, window_bounds = array<i64: 8, 256>}, {transform_indices = @transform_2, window_bounds = array<i64: 8, 256>}]} {
    %c0 = arith.constant 0 : index
    %c0_0 = arith.constant 0 : index
    %0 = memref.load %arg1[%c0, %c0_0] : memref<1x1xf32, #tpu.memory_space<smem>>
    %cst = arith.constant 0.000000e+00 : f32
    %1 = arith.subf %cst, %0 : f32
    %c0_1 = arith.constant 0 : index
    %c0_2 = arith.constant 0 : index
    %2 = vector.load %arg2[%c0_1, %c0_2] : memref<8x256xf32, #tpu.memory_space<vmem>>, vector<8x256xf32>
    %3 = vector.broadcast %1 : f32 to vector<8x256xf32>
    %4 = arith.mulf %3, %2 : vector<8x256xf32>
    %c0_3 = arith.constant 0 : index
    %c0_4 = arith.constant 0 : index
    %5 = vector.load %arg3[%c0_3, %c0_4] : memref<8x256xf32, #tpu.memory_space<vmem>>, vector<8x256xf32>
    tpu.vector_store %arg3[%c0_3, %c0_4], %4 {strides = array<i32>} : memref<8x256xf32, #tpu.memory_space<vmem>>, vector<8x256xf32>,
    return
  }
  func.func @transform_0(%arg0: i32) -> (i32, i32) {
    %c0_i32 = arith.constant 0 : i32
    %c0_i32_0 = arith.constant 0 : i32
    %c0_i32_1 = arith.constant 0 : i32
    return %c0_i32, %c0_i32_0 : i32, i32
  }
  func.func @transform_1(%arg0: i32) -> (i32, i32) {
    %c0_i32 = arith.constant 0 : i32
    %c0_i32_0 = arith.constant 0 : i32
    return %arg0, %c0_i32 : i32, i32
  }
  func.func @transform_2(%arg0: i32) -> (i32, i32) {
    %c0_i32 = arith.constant 0 : i32
    %c0_i32_0 = arith.constant 0 : i32
    return %arg0, %c0_i32 : i32, i32
  }
}

</mosaic_0001>

<bundles_post_ra>
// kernel: tpu_custom_call.1
= control target key start
LH: loop header
LB: loop body
LE: loop exit
PB: predicated region body
PF: predicated region fallthrough
CT: control target
= control target key end

     0   :  { %8 = vsyncpa [#allocation4], 0  ;;  %s121_s0 = inlined_call_operand.<no memory space> [shape: f32[1,1], index: 0, kind: input, shape index: {}]   ;;  %s122_s1 = inlined_call_operand.hbm [shape: f32[8,256], index: 1, kind: input, shape index: {}, may-alias: {1,2}]   ;;  %s123_s2 = inlined_call_operand.hbm [shape: f32[8,256], index: 2, kind: output, shape index: {}, may-alias: {1,2}]  }
   0x1   :  { %9 = vsyncpa [#allocation5], 0  ;;  %s95_s9 = smov [#allocation3]  }
   0x2   :  { %s18_s10 = sshll.u32 %s95_s9, 4  ;;  %s19_s10 = int_to_ptr.vmem [resolvable:$true] %s18_s10 }
   0x3   :  { %s59_s11 = scalar_lea.vmem %s19_s10, 256  ;;  %p64_p1 = scmp.lt.s32.totalorder %s19_s10, %s19_s10 }
   0x4   :  { %p60_p0 = scmp.ne.s32.totalorder %s19_s10, %s59_s11  ;;  %p65_p2 = scmp.lt.s32.totalorder %s59_s11, %s59_s11 }
   0x6   :  { %p66_p3 = por %p65_p2, %p64_p1 }
   0x8   :  { %p67_p4 = pnand %p66_p3, %p60_p0 }
   0xa   :  { %70 = shalt.err (!%p67_p4)
}
   0xb   :  { %21 = dma.hbm_to_vmem [thread:$0]  %s122_s1, 256, %s19_s10, [#allocation4]  }
   0xc   :  { %91 = dma.done.wait [#allocation4], 256  }
   0xd   :  { %92 = vsyncadd [#allocation4], 4294967040  ;;  %s26_s16 = ssub.f32 0.0, %s121_s0  ;;  %s96_s17 = smov [#allocation6]   ;;  %v27_v1 = vld [vmem:[#allocation3] sm:$0xff]  ;;  %v28_v2 = vld [vmem:[#allocation3 + $0x8] sm:$0xff] }
   0xe   :  { %s40_s18 = sshll.u32 %s96_s17, 4  ;;  %s41_s18 = int_to_ptr.vmem [resolvable:$true] %s40_s18 }
   0xf   :  { %v29_v0 = vstv %s26_s16  ;;  %s71_s19 = scalar_lea.vmem %s41_s18, 256  ;;  %p76_p6 = scmp.lt.s32.totalorder %s41_s18, %s41_s18 }
  0x10   :  { %v30_v3 = vmul.f32 %v29_v0, %v27_v1  ;;  %v31_v4 = vmul.f32 %v29_v0, %v28_v2  ;;  %p72_p5 = scmp.ne.s32.totalorder %s41_s18, %s71_s19  ;;  %p77_p7 = scmp.lt.s32.totalorder %s71_s19, %s71_s19 }
  0x12   :  { %32 = vst [vmem:[#allocation6] sm:$0xff] %v30_v3  ;;  %33 = vst [vmem:[#allocation6 + $0x8] sm:$0xff] %v31_v4  ;;  %p78_p8 = por %p77_p7, %p76_p6 }
  0x14   :  { %p79_p9 = pnand %p78_p8, %p72_p5 }
  0x16   :  { %82 = shalt.err (!%p79_p9)
}
  0x17   :  { %43 = dma.vmem_to_hbm [thread:$0]  %s41_s18, 256, %s123_s2, [#allocation5]  }
  0x18   :  { %93 = dma.done.wait [#allocation5], 256  }
  0x19   :  { %94 = vsyncadd [#allocation5], 4294967040 }
  0x1a   :  { %47 = vsyncpa [#allocation4], 1 }
  0x1b   :  { %48 = vsyncpa [#allocation5], 1 }

</bundles_post_ra>
